<compile_context>
chip_gen: v7x
topology: tpu7x:2x2x1
jax: 0.10.0
libtpu: 0.0.40
codegen_flags: <defaults>
</compile_context>

<pallas_src>
import functools

import jax
import jax.numpy as jnp
from jax.experimental import pallas as pl
from jax.experimental.pallas import tpu as pltpu

EPS = 1e-5
NEG_SLOPE = 0.2


def _leaky(v):
    return jnp.where(v > 0, v, NEG_SLOPE * v)


def _bn_rows(v, gamma, beta):
    """BatchNorm over the lane axis of a (C, NHW) tensor (two-pass, centered)."""
    inv_n = 1.0 / float(v.shape[1])
    mean = jnp.sum(v, axis=1, keepdims=True) * inv_n
    d = v - mean
    var = jnp.sum(d * d, axis=1, keepdims=True) * inv_n
    return d * jax.lax.rsqrt(var + EPS) * gamma + beta


def last_kernel(isrelu, H, W,
                x_ref, widx_ref, hidx_ref,
                w3_ref, b3_ref, g1_ref, be1_ref,
                g2_ref, be2_ref, w1a_ref, b1a_ref,
                g3_ref, be3_ref, w1b_ref, b1b_ref,
                o_ref, a_ref):
    Cin, NHW = x_ref.shape

    # --- BatchNorm2d(Cin): lane-dense batch statistics (two-pass variance) ---
    x = x_ref[...]
    xn = _bn_rows(x, g1_ref[...], be1_ref[...])

    # --- boundary masks for ReflectionPad2d(1) (precomputed lane indices) ---
    wi = jnp.broadcast_to(widx_ref[...], (Cin, NHW))
    hi = jnp.broadcast_to(hidx_ref[...], (Cin, NHW))
    w_lo = wi == 0
    w_hi = wi == (W - 1)
    h_lo = hi == 0
    h_hi = hi == (H - 1)

    def shift(v, s):
        # result[p] = v[(p + s) % NHW]; cyclic wrap positions are exactly the
        # boundary lanes that the jnp.where reflection masks overwrite.
        return pltpu.roll(v, (-s) % NHW, axis=1)

    # --- horizontal taps (reflect at w==0 / w==W-1) ---
    xm1 = shift(xn, -1)   # value at (h, w-1)
    xp1 = shift(xn, +1)   # value at (h, w+1)
    hx = {
        -1: jnp.where(w_lo, xp1, xm1),
        0: xn,
        +1: jnp.where(w_hi, xm1, xp1),
    }

    # --- vertical taps (reflect at h==0 / h==H-1); write 9 im2col row blocks ---
    # a_ref row block t*Cin:(t+1)*Cin holds tap t = 3*ky + kx, matching the
    # (Cout, 9*Cin) weight packing done in the wrapper.
    for dx in (-1, 0, 1):
        hv = hx[dx]
        vm = shift(hv, -W)   # value at (h-1, .)
        vp = shift(hv, +W)   # value at (h+1, .)
        taps = {
            -1: jnp.where(h_lo, vp, vm),
            0: hv,
            +1: jnp.where(h_hi, vm, vp),
        }
        for dy in (-1, 0, 1):
            t = 3 * (dy + 1) + (dx + 1)
            a_ref[t * Cin:(t + 1) * Cin, :] = taps[dy].astype(a_ref.dtype)

    # --- Conv2d(Cin, Cout, 3): ONE (Cout, 9Cin) @ (9Cin, NHW) bf16 MXU matmul ---
    h1 = jnp.dot(w3_ref[...], a_ref[...],
                 preferred_element_type=jnp.float32) + b3_ref[...]   # (Cout, NHW)

    # --- BatchNorm2d(Cout) + LeakyReLU(0.2) ---
    h1 = _leaky(_bn_rows(h1, g2_ref[...], be2_ref[...]))

    # --- Conv2d(Cout, Cout, 1) + BN + LeakyReLU ---
    h2 = jnp.dot(w1a_ref[...], h1.astype(w1a_ref.dtype),
                 preferred_element_type=jnp.float32) + b1a_ref[...]  # (Cout, NHW)
    h2 = _leaky(_bn_rows(h2, g3_ref[...], be3_ref[...]))

    # --- Conv2d(Cout, 1, 1): VPU weighted sum + sublane reduce ---
    y = jnp.sum(h2 * w1b_ref[...], axis=0, keepdims=True) + b1b_ref[...]  # (1, NHW)
    if isrelu:
        y = jax.nn.sigmoid(y)

    o_ref[...] = y    # lane-dense (1, N*H*W) store


def _vmem_limit_bytes(Cin, Cout, NHW):
    """Honest, generation-aware scoped-VMEM request."""
    f32, bf16, i32 = 4, 2, 4
    r8 = lambda d: -(-d // 8) * 8
    r16 = lambda d: -(-d // 16) * 16
    r128 = lambda d: -(-d // 128) * 128
    lane = r128(NHW)
    ins = (r8(Cin) * lane * f32                      # x
           + 2 * r8(1) * lane * i32                  # w_idx, h_idx
           + r16(Cout) * r128(9 * Cin) * bf16        # packed 3x3 weights
           + r16(Cout) * r128(Cout) * bf16           # 1x1 weights
           + 10 * r8(max(Cin, Cout)) * r128(1) * f32)  # biases / BN affines
    outs = r8(1) * lane * f32
    scratch = r16(9 * Cin) * lane * bf16              # im2col matrix (not dbl-buffered)
    est = 2 * (ins + outs) + scratch + (2 << 20)      # inputs/outputs double-buffered
    try:
        cap = int(0.6 * pltpu.get_tpu_info().vmem_capacity_bytes)
    except Exception:
        cap = 38 << 20   # ~60% of v7x's 64 MiB per-core VMEM
    return int(min(cap, max(4 << 20, est)))


def make_params(in_channels, out_channels, key):
    ks = jax.random.split(key, 6)
    p = {}
    # Conv weights laid out for channel-first matmuls:
    #   w3 : (3, 3, Cin, Cout)  HWIO; packed to (Cout, 9*Cin) in the wrapper
    #   w1a: (Cout, Cout)       [out, in] for left-multiplication
    #   w1b: (Cout, 1)          per-channel weights of the final 1-channel proj
    p["w3"] = 0.1 * jax.random.normal(ks[0], (3, 3, in_channels, out_channels), jnp.float32)
    p["b3"] = 0.1 * jax.random.normal(ks[1], (out_channels, 1), jnp.float32)
    p["w1a"] = 0.1 * jax.random.normal(ks[2], (out_channels, out_channels), jnp.float32)
    p["b1a"] = 0.1 * jax.random.normal(ks[3], (out_channels, 1), jnp.float32)
    p["w1b"] = 0.1 * jax.random.normal(ks[4], (out_channels, 1), jnp.float32)
    p["b1b"] = 0.1 * jax.random.normal(ks[5], (1, 1), jnp.float32)
    # BatchNorm affine params (PyTorch default init: gamma=1, beta=0).
    p["g1"] = jnp.ones((in_channels, 1), jnp.float32)
    p["be1"] = jnp.zeros((in_channels, 1), jnp.float32)
    p["g2"] = jnp.ones((out_channels, 1), jnp.float32)
    p["be2"] = jnp.zeros((out_channels, 1), jnp.float32)
    p["g3"] = jnp.ones((out_channels, 1), jnp.float32)
    p["be3"] = jnp.zeros((out_channels, 1), jnp.float32)
    return p


def last_forward(x_nchw, params, isrelu=True):
    """Forward pass of `Last`. Input/output are NCHW like PyTorch."""
    N, Cin, H, W = x_nchw.shape
    assert H >= 2 and W >= 2, "ReflectionPad2d(1) requires H >= 2 and W >= 2"
    Cout = params["w1a"].shape[0]
    NHW = N * H * W

    # Lane-dense channel-major layout: (Cin, N*H*W).
    x = jnp.transpose(x_nchw, (1, 0, 2, 3)).reshape(Cin, NHW).astype(jnp.float32)

    # Per-pixel (h, w) coordinates along the flattened lane axis (drives the
    # in-kernel reflection selects; avoids in-kernel integer div/mod).
    p_idx = jnp.arange(NHW, dtype=jnp.int32)
    w_idx = (p_idx % W).reshape(1, NHW)
    h_idx = ((p_idx // W) % H).reshape(1, NHW)

    # Pack 3x3 weights for the fused im2col matmul: column = (3*ky+kx)*Cin + ci.
    # bf16 MXU operands; accumulation stays f32 inside the kernel.
    w3p = params["w3"].reshape(9 * Cin, Cout).T.astype(jnp.bfloat16)   # (Cout, 9*Cin)
    w1a = params["w1a"].astype(jnp.bfloat16)

    args = (x, w_idx, h_idx, w3p, params["b3"], params["g1"], params["be1"],
            params["g2"], params["be2"], w1a, params["b1a"],
            params["g3"], params["be3"], params["w1b"], params["b1b"])

    def spec(shape):
        zeros = (0,) * len(shape)
        return pl.BlockSpec(shape, lambda i, z=zeros: z)

    out = pl.pallas_call(
        functools.partial(last_kernel, isrelu, H, W),
        out_shape=jax.ShapeDtypeStruct((1, NHW), jnp.float32),
        grid=(1,),
        in_specs=[spec(a.shape) for a in args],
        out_specs=spec((1, NHW)),
        scratch_shapes=[
            pltpu.VMEM((9 * Cin, NHW), jnp.bfloat16),   # fused im2col matrix
        ],
        compiler_params=pltpu.CompilerParams(
            dimension_semantics=("arbitrary",),
            vmem_limit_bytes=_vmem_limit_bytes(Cin, Cout, NHW),
        ),
    )(*args)

    return out.reshape(N, 1, H, W)                                # NCHW (N,1,H,W)


if __name__ == "__main__":
    key = jax.random.PRNGKey(0)
    k_x, k_p = jax.random.split(key)

    N, Cin, Cout, H, W = 2, 4, 8, 16, 16
    x = jax.random.normal(k_x, (N, Cin, H, W), jnp.float32)
    params = make_params(Cin, Cout, k_p)

    y = last_forward(x, params, isrelu=True)
    jax.block_until_ready(y)

    assert y.shape == (N, 1, H, W), y.shape
    assert bool(jnp.all(jnp.isfinite(y)))
    # isrelu=True ends in Sigmoid -> outputs in (0, 1)
    assert bool(jnp.all((y > 0.0) & (y < 1.0)))
    print("KERNEL_OK")
</pallas_src>

<mosaic_0001>
module attributes {stable_mosaic.version = 11 : i64} {
  func.func @last_kernel(%arg0: i32, %arg1: memref<4x512xf32, #tpu.memory_space<vmem>>, %arg2: memref<1x512xi32, #tpu.memory_space<vmem>>, %arg3: memref<1x512xi32, #tpu.memory_space<vmem>>, %arg4: memref<8x36xbf16, #tpu.memory_space<vmem>>, %arg5: memref<8x1xf32, #tpu.memory_space<vmem>>, %arg6: memref<4x1xf32, #tpu.memory_space<vmem>>, %arg7: memref<4x1xf32, #tpu.memory_space<vmem>>, %arg8: memref<8x1xf32, #tpu.memory_space<vmem>>, %arg9: memref<8x1xf32, #tpu.memory_space<vmem>>, %arg10: memref<8x8xbf16, #tpu.memory_space<vmem>>, %arg11: memref<8x1xf32, #tpu.memory_space<vmem>>, %arg12: memref<8x1xf32, #tpu.memory_space<vmem>>, %arg13: memref<8x1xf32, #tpu.memory_space<vmem>>, %arg14: memref<8x1xf32, #tpu.memory_space<vmem>>, %arg15: memref<1x1xf32, #tpu.memory_space<vmem>>, %arg16: memref<1x512xf32, #tpu.memory_space<vmem>>, %arg17: memref<36x512xbf16, #tpu.memory_space<vmem>>) attributes {dimension_semantics = [#tpu.dimension_semantics<arbitrary>], iteration_bounds = array<i64: 1>, scalar_prefetch = 0 : i64, scratch_operands = 1 : i64, tpu.core_type = #tpu.core_type<tc>, window_params = [{pipeline_mode = #tpu.pipeline_mode<synchronous>, transform_indices = @transform_0, window_bounds = array<i64: 4, 512>}, {pipeline_mode = #tpu.pipeline_mode<synchronous>, transform_indices = @transform_1, window_bounds = array<i64: 1, 512>}, {pipeline_mode = #tpu.pipeline_mode<synchronous>, transform_indices = @transform_2, window_bounds = array<i64: 1, 512>}, {pipeline_mode = #tpu.pipeline_mode<synchronous>, transform_indices = @transform_3, window_bounds = array<i64: 8, 36>}, {pipeline_mode = #tpu.pipeline_mode<synchronous>, transform_indices = @transform_4, window_bounds = array<i64: 8, 1>}, {pipeline_mode = #tpu.pipeline_mode<synchronous>, transform_indices = @transform_5, window_bounds = array<i64: 4, 1>}, {pipeline_mode = #tpu.pipeline_mode<synchronous>, transform_indices = @transform_6, window_bounds = array<i64: 4, 1>}, {pipeline_mode = #tpu.pipeline_mode<synchronous>, transform_indices = @transform_7, window_bounds = array<i64: 8, 1>}, {pipeline_mode = #tpu.pipeline_mode<synchronous>, transform_indices = @transform_8, window_bounds = array<i64: 8, 1>}, {pipeline_mode = #tpu.pipeline_mode<synchronous>, transform_indices = @transform_9, window_bounds = array<i64: 8, 8>}, {pipeline_mode = #tpu.pipeline_mode<synchronous>, transform_indices = @transform_10, window_bounds = array<i64: 8, 1>}, {pipeline_mode = #tpu.pipeline_mode<synchronous>, transform_indices = @transform_11, window_bounds = array<i64: 8, 1>}, {pipeline_mode = #tpu.pipeline_mode<synchronous>, transform_indices = @transform_12, window_bounds = array<i64: 8, 1>}, {pipeline_mode = #tpu.pipeline_mode<synchronous>, transform_indices = @transform_13, window_bounds = array<i64: 8, 1>}, {pipeline_mode = #tpu.pipeline_mode<synchronous>, transform_indices = @transform_14, window_bounds = array<i64: 1, 1>}, {pipeline_mode = #tpu.pipeline_mode<synchronous>, transform_indices = @transform_15, window_bounds = array<i64: 1, 512>}]} {
    %c0 = arith.constant 0 : index
    %c0_0 = arith.constant 0 : index
    %0 = vector.load %arg1[%c0, %c0_0] : memref<4x512xf32, #tpu.memory_space<vmem>>, vector<4x512xf32>
    %c0_1 = arith.constant 0 : index
    %c0_2 = arith.constant 0 : index
    %1 = vector.load %arg6[%c0_1, %c0_2] : memref<4x1xf32, #tpu.memory_space<vmem>>, vector<4x1xf32>
    %c0_3 = arith.constant 0 : index
    %c0_4 = arith.constant 0 : index
    %2 = vector.load %arg7[%c0_3, %c0_4] : memref<4x1xf32, #tpu.memory_space<vmem>>, vector<4x1xf32>
    %cst = arith.constant dense<0.000000e+00> : vector<4xf32>
    %3 = vector.multi_reduction <add>, %0, %cst [1] : vector<4x512xf32> to vector<4xf32>
    %4 = vector.shape_cast %3 : vector<4xf32> to vector<4x1xf32>
    %cst_5 = arith.constant 0.001953125 : f32
    %5 = vector.broadcast %cst_5 : f32 to vector<4x1xf32>
    %6 = arith.mulf %4, %5 : vector<4x1xf32>
    %7 = vector.broadcast %6 : vector<4x1xf32> to vector<4x512xf32>
    %8 = arith.subf %0, %7 : vector<4x512xf32>
    %9 = arith.mulf %8, %8 : vector<4x512xf32>
    %cst_6 = arith.constant dense<0.000000e+00> : vector<4xf32>
    %10 = vector.multi_reduction <add>, %9, %cst_6 [1] : vector<4x512xf32> to vector<4xf32>
    %11 = vector.shape_cast %10 : vector<4xf32> to vector<4x1xf32>
    %cst_7 = arith.constant 0.001953125 : f32
    %12 = vector.broadcast %cst_7 : f32 to vector<4x1xf32>
    %13 = arith.mulf %11, %12 : vector<4x1xf32>
    %cst_8 = arith.constant 9.99999974E-6 : f32
    %14 = vector.broadcast %cst_8 : f32 to vector<4x1xf32>
    %15 = arith.addf %13, %14 : vector<4x1xf32>
    %16 = math.rsqrt %15 : vector<4x1xf32>
    %17 = vector.broadcast %16 : vector<4x1xf32> to vector<4x512xf32>
    %18 = arith.mulf %8, %17 : vector<4x512xf32>
    %19 = vector.broadcast %1 : vector<4x1xf32> to vector<4x512xf32>
    %20 = arith.mulf %18, %19 : vector<4x512xf32>
    %21 = vector.broadcast %2 : vector<4x1xf32> to vector<4x512xf32>
    %22 = arith.addf %20, %21 : vector<4x512xf32>
    %c0_9 = arith.constant 0 : index
    %c0_10 = arith.constant 0 : index
    %23 = vector.load %arg2[%c0_9, %c0_10] : memref<1x512xi32, #tpu.memory_space<vmem>>, vector<1x512xi32>
    %24 = vector.shape_cast %23 : vector<1x512xi32> to vector<1x512xi32>
    %25 = vector.broadcast %24 : vector<1x512xi32> to vector<4x512xi32>
    %c0_11 = arith.constant 0 : index
    %c0_12 = arith.constant 0 : index
    %26 = vector.load %arg3[%c0_11, %c0_12] : memref<1x512xi32, #tpu.memory_space<vmem>>, vector<1x512xi32>
    %27 = vector.shape_cast %26 : vector<1x512xi32> to vector<1x512xi32>
    %28 = vector.broadcast %27 : vector<1x512xi32> to vector<4x512xi32>
    %c0_i32 = arith.constant 0 : i32
    %29 = vector.broadcast %c0_i32 : i32 to vector<4x512xi32>
    %30 = arith.cmpi eq, %25, %29 : vector<4x512xi32>
    %c15_i32 = arith.constant 15 : i32
    %31 = vector.broadcast %c15_i32 : i32 to vector<4x512xi32>
    %32 = arith.cmpi eq, %25, %31 : vector<4x512xi32>
    %c0_i32_13 = arith.constant 0 : i32
    %33 = vector.broadcast %c0_i32_13 : i32 to vector<4x512xi32>
    %34 = arith.cmpi eq, %28, %33 : vector<4x512xi32>
    %c15_i32_14 = arith.constant 15 : i32
    %35 = vector.broadcast %c15_i32_14 : i32 to vector<4x512xi32>
    %36 = arith.cmpi eq, %28, %35 : vector<4x512xi32>
    %c1_i32 = arith.constant 1 : i32
    %37 = tpu.dynamic_rotate %22 by %c1_i32 dim 1 : vector<4x512xf32>, i32 -> vector<4x512xf32>
    %c511_i32 = arith.constant 511 : i32
    %38 = tpu.dynamic_rotate %22 by %c511_i32 dim 1 : vector<4x512xf32>, i32 -> vector<4x512xf32>
    %39 = arith.select %30, %38, %37 : vector<4x512xi1>, vector<4x512xf32>
    %40 = arith.select %32, %37, %38 : vector<4x512xi1>, vector<4x512xf32>
    %c16_i32 = arith.constant 16 : i32
    %41 = tpu.dynamic_rotate %39 by %c16_i32 dim 1 : vector<4x512xf32>, i32 -> vector<4x512xf32>
    %c496_i32 = arith.constant 496 : i32
    %42 = tpu.dynamic_rotate %39 by %c496_i32 dim 1 : vector<4x512xf32>, i32 -> vector<4x512xf32>
    %43 = arith.select %34, %42, %41 : vector<4x512xi1>, vector<4x512xf32>
    %44 = arith.select %36, %41, %42 : vector<4x512xi1>, vector<4x512xf32>
    %45 = arith.truncf %43 : vector<4x512xf32> to vector<4x512xbf16>
    %c0_15 = arith.constant 0 : index
    %c0_16 = arith.constant 0 : index
    %46 = vector.load %arg17[%c0_15, %c0_16] : memref<36x512xbf16, #tpu.memory_space<vmem>>, vector<4x512xbf16>
    tpu.vector_store %arg17[%c0_15, %c0_16], %45 {strides = array<i32>} : memref<36x512xbf16, #tpu.memory_space<vmem>>, vector<4x512xbf16>,
    %47 = arith.truncf %39 : vector<4x512xf32> to vector<4x512xbf16>
    %c12 = arith.constant 12 : index
    %c0_17 = arith.constant 0 : index
    %48 = vector.load %arg17[%c12, %c0_17] : memref<36x512xbf16, #tpu.memory_space<vmem>>, vector<4x512xbf16>
    tpu.vector_store %arg17[%c12, %c0_17], %47 {strides = array<i32>} : memref<36x512xbf16, #tpu.memory_space<vmem>>, vector<4x512xbf16>,
    %49 = arith.truncf %44 : vector<4x512xf32> to vector<4x512xbf16>
    %c24 = arith.constant 24 : index
    %c0_18 = arith.constant 0 : index
    %50 = vector.load %arg17[%c24, %c0_18] : memref<36x512xbf16, #tpu.memory_space<vmem>>, vector<4x512xbf16>
    tpu.vector_store %arg17[%c24, %c0_18], %49 {strides = array<i32>} : memref<36x512xbf16, #tpu.memory_space<vmem>>, vector<4x512xbf16>,
    %c16_i32_19 = arith.constant 16 : i32
    %51 = tpu.dynamic_rotate %22 by %c16_i32_19 dim 1 : vector<4x512xf32>, i32 -> vector<4x512xf32>
    %c496_i32_20 = arith.constant 496 : i32
    %52 = tpu.dynamic_rotate %22 by %c496_i32_20 dim 1 : vector<4x512xf32>, i32 -> vector<4x512xf32>
    %53 = arith.select %34, %52, %51 : vector<4x512xi1>, vector<4x512xf32>
    %54 = arith.select %36, %51, %52 : vector<4x512xi1>, vector<4x512xf32>
    %55 = arith.truncf %53 : vector<4x512xf32> to vector<4x512xbf16>
    %c4 = arith.constant 4 : index
    %c0_21 = arith.constant 0 : index
    %56 = vector.load %arg17[%c4, %c0_21] : memref<36x512xbf16, #tpu.memory_space<vmem>>, vector<4x512xbf16>
    tpu.vector_store %arg17[%c4, %c0_21], %55 {strides = array<i32>} : memref<36x512xbf16, #tpu.memory_space<vmem>>, vector<4x512xbf16>,
    %57 = arith.truncf %22 : vector<4x512xf32> to vector<4x512xbf16>
    %c16 = arith.constant 16 : index
    %c0_22 = arith.constant 0 : index
    %58 = vector.load %arg17[%c16, %c0_22] : memref<36x512xbf16, #tpu.memory_space<vmem>>, vector<4x512xbf16>
    tpu.vector_store %arg17[%c16, %c0_22], %57 {strides = array<i32>} : memref<36x512xbf16, #tpu.memory_space<vmem>>, vector<4x512xbf16>,
    %59 = arith.truncf %54 : vector<4x512xf32> to vector<4x512xbf16>
    %c28 = arith.constant 28 : index
    %c0_23 = arith.constant 0 : index
    %60 = vector.load %arg17[%c28, %c0_23] : memref<36x512xbf16, #tpu.memory_space<vmem>>, vector<4x512xbf16>
    tpu.vector_store %arg17[%c28, %c0_23], %59 {strides = array<i32>} : memref<36x512xbf16, #tpu.memory_space<vmem>>, vector<4x512xbf16>,
    %c16_i32_24 = arith.constant 16 : i32
    %61 = tpu.dynamic_rotate %40 by %c16_i32_24 dim 1 : vector<4x512xf32>, i32 -> vector<4x512xf32>
    %c496_i32_25 = arith.constant 496 : i32
    %62 = tpu.dynamic_rotate %40 by %c496_i32_25 dim 1 : vector<4x512xf32>, i32 -> vector<4x512xf32>
    %63 = arith.select %34, %62, %61 : vector<4x512xi1>, vector<4x512xf32>
    %64 = arith.select %36, %61, %62 : vector<4x512xi1>, vector<4x512xf32>
    %65 = arith.truncf %63 : vector<4x512xf32> to vector<4x512xbf16>
    %c8 = arith.constant 8 : index
    %c0_26 = arith.constant 0 : index
    %66 = vector.load %arg17[%c8, %c0_26] : memref<36x512xbf16, #tpu.memory_space<vmem>>, vector<4x512xbf16>
    tpu.vector_store %arg17[%c8, %c0_26], %65 {strides = array<i32>} : memref<36x512xbf16, #tpu.memory_space<vmem>>, vector<4x512xbf16>,
    %67 = arith.truncf %40 : vector<4x512xf32> to vector<4x512xbf16>
    %c20 = arith.constant 20 : index
    %c0_27 = arith.constant 0 : index
    %68 = vector.load %arg17[%c20, %c0_27] : memref<36x512xbf16, #tpu.memory_space<vmem>>, vector<4x512xbf16>
    tpu.vector_store %arg17[%c20, %c0_27], %67 {strides = array<i32>} : memref<36x512xbf16, #tpu.memory_space<vmem>>, vector<4x512xbf16>,
    %69 = arith.truncf %64 : vector<4x512xf32> to vector<4x512xbf16>
    %c32 = arith.constant 32 : index
    %c0_28 = arith.constant 0 : index
    %70 = vector.load %arg17[%c32, %c0_28] : memref<36x512xbf16, #tpu.memory_space<vmem>>, vector<4x512xbf16>
    tpu.vector_store %arg17[%c32, %c0_28], %69 {strides = array<i32>} : memref<36x512xbf16, #tpu.memory_space<vmem>>, vector<4x512xbf16>,
    %c0_29 = arith.constant 0 : index
    %c0_30 = arith.constant 0 : index
    %71 = vector.load %arg4[%c0_29, %c0_30] : memref<8x36xbf16, #tpu.memory_space<vmem>>, vector<8x36xbf16>
    %c0_31 = arith.constant 0 : index
    %c0_32 = arith.constant 0 : index
    %72 = vector.load %arg17[%c0_31, %c0_32] : memref<36x512xbf16, #tpu.memory_space<vmem>>, vector<36x512xbf16>
    %cst_33 = arith.constant dense<0.000000e+00> : vector<8x512xf32>
    %73 = tpu.matmul %71, %72, %cst_33 {dimension_numbers = #tpu.dot_dimension_numbers<[1], [0], [0], [1], [0, 0, 1, 1], [], []>} : vector<8x36xbf16>, vector<36x512xbf16>, vector<8x512xf32> -> vector<8x512xf32>
    %c0_34 = arith.constant 0 : index
    %c0_35 = arith.constant 0 : index
    %74 = vector.load %arg5[%c0_34, %c0_35] : memref<8x1xf32, #tpu.memory_space<vmem>>, vector<8x1xf32>
    %75 = vector.broadcast %74 : vector<8x1xf32> to vector<8x512xf32>
    %76 = arith.addf %73, %75 : vector<8x512xf32>
    %c0_36 = arith.constant 0 : index
    %c0_37 = arith.constant 0 : index
    %77 = vector.load %arg8[%c0_36, %c0_37] : memref<8x1xf32, #tpu.memory_space<vmem>>, vector<8x1xf32>
    %c0_38 = arith.constant 0 : index
    %c0_39 = arith.constant 0 : index
    %78 = vector.load %arg9[%c0_38, %c0_39] : memref<8x1xf32, #tpu.memory_space<vmem>>, vector<8x1xf32>
    %cst_40 = arith.constant dense<0.000000e+00> : vector<8xf32>
    %79 = vector.multi_reduction <add>, %76, %cst_40 [1] : vector<8x512xf32> to vector<8xf32>
    %80 = vector.shape_cast %79 : vector<8xf32> to vector<8x1xf32>
    %cst_41 = arith.constant 0.001953125 : f32
    %81 = vector.broadcast %cst_41 : f32 to vector<8x1xf32>
    %82 = arith.mulf %80, %81 : vector<8x1xf32>
    %83 = vector.broadcast %82 : vector<8x1xf32> to vector<8x512xf32>
    %84 = arith.subf %76, %83 : vector<8x512xf32>
    %85 = arith.mulf %84, %84 : vector<8x512xf32>
    %cst_42 = arith.constant dense<0.000000e+00> : vector<8xf32>
    %86 = vector.multi_reduction <add>, %85, %cst_42 [1] : vector<8x512xf32> to vector<8xf32>
    %87 = vector.shape_cast %86 : vector<8xf32> to vector<8x1xf32>
    %cst_43 = arith.constant 0.001953125 : f32
    %88 = vector.broadcast %cst_43 : f32 to vector<8x1xf32>
    %89 = arith.mulf %87, %88 : vector<8x1xf32>
    %cst_44 = arith.constant 9.99999974E-6 : f32
    %90 = vector.broadcast %cst_44 : f32 to vector<8x1xf32>
    %91 = arith.addf %89, %90 : vector<8x1xf32>
    %92 = math.rsqrt %91 : vector<8x1xf32>
    %93 = vector.broadcast %92 : vector<8x1xf32> to vector<8x512xf32>
    %94 = arith.mulf %84, %93 : vector<8x512xf32>
    %95 = vector.broadcast %77 : vector<8x1xf32> to vector<8x512xf32>
    %96 = arith.mulf %94, %95 : vector<8x512xf32>
    %97 = vector.broadcast %78 : vector<8x1xf32> to vector<8x512xf32>
    %98 = arith.addf %96, %97 : vector<8x512xf32>
    %cst_45 = arith.constant 0.000000e+00 : f32
    %99 = vector.broadcast %cst_45 : f32 to vector<8x512xf32>
    %100 = arith.cmpf ogt, %98, %99 : vector<8x512xf32>
    %cst_46 = arith.constant 2.000000e-01 : f32
    %101 = vector.broadcast %cst_46 : f32 to vector<8x512xf32>
    %102 = arith.mulf %101, %98 : vector<8x512xf32>
    %103 = arith.select %100, %98, %102 : vector<8x512xi1>, vector<8x512xf32>
    %c0_47 = arith.constant 0 : index
    %c0_48 = arith.constant 0 : index
    %104 = vector.load %arg10[%c0_47, %c0_48] : memref<8x8xbf16, #tpu.memory_space<vmem>>, vector<8x8xbf16>
    %105 = arith.truncf %103 : vector<8x512xf32> to vector<8x512xbf16>
    %cst_49 = arith.constant dense<0.000000e+00> : vector<8x512xf32>
    %106 = tpu.matmul %104, %105, %cst_49 {dimension_numbers = #tpu.dot_dimension_numbers<[1], [0], [0], [1], [0, 0, 1, 1], [], []>} : vector<8x8xbf16>, vector<8x512xbf16>, vector<8x512xf32> -> vector<8x512xf32>
    %c0_50 = arith.constant 0 : index
    %c0_51 = arith.constant 0 : index
    %107 = vector.load %arg11[%c0_50, %c0_51] : memref<8x1xf32, #tpu.memory_space<vmem>>, vector<8x1xf32>
    %108 = vector.broadcast %107 : vector<8x1xf32> to vector<8x512xf32>
    %109 = arith.addf %106, %108 : vector<8x512xf32>
    %c0_52 = arith.constant 0 : index
    %c0_53 = arith.constant 0 : index
    %110 = vector.load %arg12[%c0_52, %c0_53] : memref<8x1xf32, #tpu.memory_space<vmem>>, vector<8x1xf32>
    %c0_54 = arith.constant 0 : index
    %c0_55 = arith.constant 0 : index
    %111 = vector.load %arg13[%c0_54, %c0_55] : memref<8x1xf32, #tpu.memory_space<vmem>>, vector<8x1xf32>
    %cst_56 = arith.constant dense<0.000000e+00> : vector<8xf32>
    %112 = vector.multi_reduction <add>, %109, %cst_56 [1] : vector<8x512xf32> to vector<8xf32>
    %113 = vector.shape_cast %112 : vector<8xf32> to vector<8x1xf32>
    %cst_57 = arith.constant 0.001953125 : f32
    %114 = vector.broadcast %cst_57 : f32 to vector<8x1xf32>
    %115 = arith.mulf %113, %114 : vector<8x1xf32>
    %116 = vector.broadcast %115 : vector<8x1xf32> to vector<8x512xf32>
    %117 = arith.subf %109, %116 : vector<8x512xf32>
    %118 = arith.mulf %117, %117 : vector<8x512xf32>
    %cst_58 = arith.constant dense<0.000000e+00> : vector<8xf32>
    %119 = vector.multi_reduction <add>, %118, %cst_58 [1] : vector<8x512xf32> to vector<8xf32>
    %120 = vector.shape_cast %119 : vector<8xf32> to vector<8x1xf32>
    %cst_59 = arith.constant 0.001953125 : f32
    %121 = vector.broadcast %cst_59 : f32 to vector<8x1xf32>
    %122 = arith.mulf %120, %121 : vector<8x1xf32>
    %cst_60 = arith.constant 9.99999974E-6 : f32
    %123 = vector.broadcast %cst_60 : f32 to vector<8x1xf32>
    %124 = arith.addf %122, %123 : vector<8x1xf32>
    %125 = math.rsqrt %124 : vector<8x1xf32>
    %126 = vector.broadcast %125 : vector<8x1xf32> to vector<8x512xf32>
    %127 = arith.mulf %117, %126 : vector<8x512xf32>
    %128 = vector.broadcast %110 : vector<8x1xf32> to vector<8x512xf32>
    %129 = arith.mulf %127, %128 : vector<8x512xf32>
    %130 = vector.broadcast %111 : vector<8x1xf32> to vector<8x512xf32>
    %131 = arith.addf %129, %130 : vector<8x512xf32>
    %cst_61 = arith.constant 0.000000e+00 : f32
    %132 = vector.broadcast %cst_61 : f32 to vector<8x512xf32>
    %133 = arith.cmpf ogt, %131, %132 : vector<8x512xf32>
    %cst_62 = arith.constant 2.000000e-01 : f32
    %134 = vector.broadcast %cst_62 : f32 to vector<8x512xf32>
    %135 = arith.mulf %134, %131 : vector<8x512xf32>
    %136 = arith.select %133, %131, %135 : vector<8x512xi1>, vector<8x512xf32>
    %c0_63 = arith.constant 0 : index
    %c0_64 = arith.constant 0 : index
    %137 = vector.load %arg14[%c0_63, %c0_64] : memref<8x1xf32, #tpu.memory_space<vmem>>, vector<8x1xf32>
    %138 = vector.broadcast %137 : vector<8x1xf32> to vector<8x512xf32>
    %139 = arith.mulf %136, %138 : vector<8x512xf32>
    %cst_65 = arith.constant dense<0.000000e+00> : vector<512xf32>
    %140 = vector.multi_reduction <add>, %139, %cst_65 [0] : vector<8x512xf32> to vector<512xf32>
    %141 = vector.shape_cast %140 : vector<512xf32> to vector<1x512xf32>
    %c0_66 = arith.constant 0 : index
    %c0_67 = arith.constant 0 : index
    %142 = vector.load %arg15[%c0_66, %c0_67] : memref<1x1xf32, #tpu.memory_space<vmem>>, vector<1x1xf32>
    %143 = vector.broadcast %142 : vector<1x1xf32> to vector<1x512xf32>
    %144 = arith.addf %141, %143 : vector<1x512xf32>
    %145 = arith.negf %144 : vector<1x512xf32>
    %146 = math.exp %145 : vector<1x512xf32>
    %cst_68 = arith.constant 1.000000e+00 : f32
    %147 = vector.broadcast %cst_68 : f32 to vector<1x512xf32>
    %148 = arith.addf %147, %146 : vector<1x512xf32>
    %149 = arith.divf %147, %148 : vector<1x512xf32>
    %c0_69 = arith.constant 0 : index
    %c0_70 = arith.constant 0 : index
    %150 = vector.load %arg16[%c0_69, %c0_70] : memref<1x512xf32, #tpu.memory_space<vmem>>, vector<1x512xf32>
    tpu.vector_store %arg16[%c0_69, %c0_70], %149 {strides = array<i32>} : memref<1x512xf32, #tpu.memory_space<vmem>>, vector<1x512xf32>,
    return
  }
  func.func @transform_0(%arg0: i32) -> (i32, i32) {
    %c0_i32 = arith.constant 0 : i32
    %c0_i32_0 = arith.constant 0 : i32
    %c0_i32_1 = arith.constant 0 : i32
    return %c0_i32, %c0_i32_0 : i32, i32
  }
  func.func @transform_1(%arg0: i32) -> (i32, i32) {
    %c0_i32 = arith.constant 0 : i32
    %c0_i32_0 = arith.constant 0 : i32
    %c0_i32_1 = arith.constant 0 : i32
    return %c0_i32, %c0_i32_0 : i32, i32
  }
  func.func @transform_2(%arg0: i32) -> (i32, i32) {
    %c0_i32 = arith.constant 0 : i32
    %c0_i32_0 = arith.constant 0 : i32
    %c0_i32_1 = arith.constant 0 : i32
    return %c0_i32, %c0_i32_0 : i32, i32
  }
  func.func @transform_3(%arg0: i32) -> (i32, i32) {
    %c0_i32 = arith.constant 0 : i32
    %c0_i32_0 = arith.constant 0 : i32
    %c0_i32_1 = arith.constant 0 : i32
    return %c0_i32, %c0_i32_0 : i32, i32
  }
  func.func @transform_4(%arg0: i32) -> (i32, i32) {
    %c0_i32 = arith.constant 0 : i32
    %c0_i32_0 = arith.constant 0 : i32
    %c0_i32_1 = arith.constant 0 : i32
    return %c0_i32, %c0_i32_0 : i32, i32
  }
  func.func @transform_5(%arg0: i32) -> (i32, i32) {
    %c0_i32 = arith.constant 0 : i32
    %c0_i32_0 = arith.constant 0 : i32
    %c0_i32_1 = arith.constant 0 : i32
    return %c0_i32, %c0_i32_0 : i32, i32
  }
  func.func @transform_6(%arg0: i32) -> (i32, i32) {
    %c0_i32 = arith.constant 0 : i32
    %c0_i32_0 = arith.constant 0 : i32
    %c0_i32_1 = arith.constant 0 : i32
    return %c0_i32, %c0_i32_0 : i32, i32
  }
  func.func @transform_7(%arg0: i32) -> (i32, i32) {
    %c0_i32 = arith.constant 0 : i32
    %c0_i32_0 = arith.constant 0 : i32
    %c0_i32_1 = arith.constant 0 : i32
    return %c0_i32, %c0_i32_0 : i32, i32
  }
  func.func @transform_8(%arg0: i32) -> (i32, i32) {
    %c0_i32 = arith.constant 0 : i32
    %c0_i32_0 = arith.constant 0 : i32
    %c0_i32_1 = arith.constant 0 : i32
    return %c0_i32, %c0_i32_0 : i32, i32
  }
  func.func @transform_9(%arg0: i32) -> (i32, i32) {
    %c0_i32 = arith.constant 0 : i32
    %c0_i32_0 = arith.constant 0 : i32
    %c0_i32_1 = arith.constant 0 : i32
    return %c0_i32, %c0_i32_0 : i32, i32
  }
  func.func @transform_10(%arg0: i32) -> (i32, i32) {
    %c0_i32 = arith.constant 0 : i32
    %c0_i32_0 = arith.constant 0 : i32
    %c0_i32_1 = arith.constant 0 : i32
    return %c0_i32, %c0_i32_0 : i32, i32
  }
  func.func @transform_11(%arg0: i32) -> (i32, i32) {
    %c0_i32 = arith.constant 0 : i32
    %c0_i32_0 = arith.constant 0 : i32
    %c0_i32_1 = arith.constant 0 : i32
    return %c0_i32, %c0_i32_0 : i32, i32
  }
  func.func @transform_12(%arg0: i32) -> (i32, i32) {
    %c0_i32 = arith.constant 0 : i32
    %c0_i32_0 = arith.constant 0 : i32
    %c0_i32_1 = arith.constant 0 : i32
    return %c0_i32, %c0_i32_0 : i32, i32
  }
  func.func @transform_13(%arg0: i32) -> (i32, i32) {
    %c0_i32 = arith.constant 0 : i32
    %c0_i32_0 = arith.constant 0 : i32
    %c0_i32_1 = arith.constant 0 : i32
    return %c0_i32, %c0_i32_0 : i32, i32
  }
  func.func @transform_14(%arg0: i32) -> (i32, i32) {
    %c0_i32 = arith.constant 0 : i32
    %c0_i32_0 = arith.constant 0 : i32
    %c0_i32_1 = arith.constant 0 : i32
    return %c0_i32, %c0_i32_0 : i32, i32
  }
  func.func @transform_15(%arg0: i32) -> (i32, i32) {
    %c0_i32 = arith.constant 0 : i32
    %c0_i32_0 = arith.constant 0 : i32
    %c0_i32_1 = arith.constant 0 : i32
    return %c0_i32, %c0_i32_0 : i32, i32
  }
}

</mosaic_0001>

<bundles_post_ra>
// kernel: tpu_custom_call.1
= control target key start
LH: loop header
LB: loop body
LE: loop exit
PB: predicated region body
PF: predicated region fallthrough
CT: control target
= control target key end

     0   :  { %s1641_s0 = inlined_call_operand.vmem [shape: f32[4,512], index: 0, kind: input, shape index: {}]   ;;  %s1642_s1 = inlined_call_operand.vmem [shape: s32[1,512], index: 1, kind: input, shape index: {}]   ;;  %s1643_s2 = inlined_call_operand.vmem [shape: s32[1,512], index: 2, kind: input, shape index: {}]   ;;  %s1644_s3 = inlined_call_operand.vmem [shape: bf16[8,36], index: 3, kind: input, shape index: {}]   ;;  %s1645_s4 = inlined_call_operand.vmem [shape: f32[8,1], index: 4, kind: input, shape index: {}]   ;;  %s1646_s5 = inlined_call_operand.vmem [shape: f32[4,1], index: 5, kind: input, shape index: {}]   ;;  %s1647_s6 = inlined_call_operand.vmem [shape: f32[4,1], index: 6, kind: input, shape index: {}]   ;;  %s1648_s7 = inlined_call_operand.vmem [shape: f32[8,1], index: 7, kind: input, shape index: {}]   ;;  %s1649_s8 = inlined_call_operand.vmem [shape: f32[8,1], index: 8, kind: input, shape index: {}]   ;;  %s1650_s9 = inlined_call_operand.vmem [shape: bf16[8,8], index: 9, kind: input, shape index: {}]   ;;  %s1651_s10 = inlined_call_operand.vmem [shape: f32[8,1], index: 10, kind: input, shape index: {}]   ;;  %s1652_s11 = inlined_call_operand.vmem [shape: f32[8,1], index: 11, kind: input, shape index: {}]   ;;  %s1653_s12 = inlined_call_operand.vmem [shape: f32[8,1], index: 12, kind: input, shape index: {}]   ;;  %s1654_s13 = inlined_call_operand.vmem [shape: f32[8,1], index: 13, kind: input, shape index: {}]   ;;  %s1655_s14 = inlined_call_operand.<no memory space> [shape: f32[1,1], index: 14, kind: input, shape index: {}]   ;;  %s1656_s15 = inlined_call_operand.hbm [shape: f32[1,512], index: 15, kind: output, shape index: {}]  }
   0x1   :  { %v20_v0 = vstv %s1655_s14 }
   0x2   :  { %21 = vst [vmem:[#allocation3] sm:$0x1] %v20_v0 }
   0x3   :  { %v54_v1 = vld [vmem:[%s1641_s0] sm:$0xff]  ;;  %v55_v2 = vld [vmem:[%s1641_s0 + $0x8] sm:$0xff]  ;;  %vm64_vm0 = vcmask 1043456  }
   0x4   :  { %v60_v3 = vcombine.high %v54_v1, %v54_v1  ;;  %v61_v4 = vcombine.high %v55_v2, %v55_v2  ;;  %v65_v5 = vsel %vm64_vm0, %v54_v1, 0.0 }
   0x5   :  { %22 = vsyncpa [#allocation5], 0  ;;  %v68_v7 = vsel %vm64_vm0, %v55_v2, 0.0  ;;  %v56_v12 = vld [vmem:[%s1646_s5] sm:$0xf]  ;;  %v1230_v13 = vmov 0   ;;  %v79_v17 = vlaneseq }
   0x6   :  { %v66_v6 = vsel %vm64_vm0, %v60_v3, 0.0  ;;  %v70_v9 = vsel %vm64_vm0, %v61_v4, 0.0  ;;  %1084 = vset.pattern.permute.xlu1 %v1230_v13  ;;  %621 = vmatprep.mubr.bf16.mxu0 %v1230_v13  ;;  %v57_v14 = vld [vmem:[%s1647_s6] sm:$0xf]  ;;  %v1231_v15 = vmov 839922192  }
   0x7   :  { %v67_v8 = vadd.f32 %v66_v6, %v65_v5  ;;  %119 = vperm.xlu1 %1084, %v56_v12   ;;  %662 = vmatprep.mubr.bf16.mxu1 %v1230_v13  ;;  %v77_v16 = vunpack.c.l.s4 %v1231_v15  ;;  %v1342_v19 = vshrl.u32 %v79_v17, 7  ;;  %s1232_s5 = smov 1   ;;  %s1233_s6 = smov 127   ;;  %v145_v59 = vld [vmem:[%s1642_s1] sm:$0xf]  ;;  %v1368_v60 = vand.u32 127, %v79_v17 }
   0x8   :  { %1165 = vset.pattern.permute.xlu0 %v1230_v13  ;;  %s1234_s26 = smov 16   ;;  %s1235_s27 = smov 112  }
   0x9   :  { %v69_v10 = vadd.f32 %v68_v7, %v67_v8  ;;  %v78_v18 = vunpack.c.0.s8 %v77_v16  ;;  %v1362_v58 = vsub.s32 0, %v1342_v19  ;;  %v152_v63 = vsub.s32 1, %v1342_v19 }
   0xa   :  { %v156_v0 = vsub.s32 2, %v1342_v19  ;;  %vm211_vm1 = vcmp.lt.s32.totalorder %v1368_v60, 1  ;;  %vm224_vm2 = vcmp.lt.s32.totalorder %v1368_v60, 127  ;;  %vm245_vm11 = vcmp.lt.s32.totalorder %v1368_v60, 16 }
   0xb   :  { %v71_v11 = vadd.f32 %v70_v9, %v69_v10  ;;  %133 = vperm.xlu1 %1084, %v57_v14   ;;  %v81_v20 = vsub.s32 %v78_v18, %v1342_v19  ;;  %v153_v6 = vrot.slane %v145_v59, %v152_v63  ;;  %vm258_vm12 = vcmp.lt.s32.totalorder %v1368_v60, 112 }
   0xc   :  { %v157_v7 = vrot.slane %v145_v59, %v156_v0 }
   0xd   :  { %72 = vadd.xlane.f32.xlu0 %v71_v11  ;;  %vm180_vm5 = vcmp.eq.s32.totalorder %v153_v6, 0  ;;  %vm184_vm9 = vcmp.eq.s32.totalorder %v153_v6, 15 }
   0xe   :  { %vm181_vm6 = vcmp.eq.s32.totalorder %v157_v7, 0  ;;  %vm185_vm10 = vcmp.eq.s32.totalorder %v157_v7, 15 }
  0x86   :  { %v120_v40 = vpop.permute.xlu1 %119 }
  0x87   :  { %v127_v46 = vrot.slane %v120_v40, %v81_v20 }
  0x8a   :  { %v134_v43 = vpop.permute.xlu1 %133 }
  0x8b   :  { %v141_v49 = vrot.slane %v134_v43, %v81_v20 }
  0x9a   :  { %v73_v21 = vpop.xlane.xlu0 %72 }
  0x9b   :  { %v74_v22 = vmul.f32 0.001953125, %v73_v21 }
  0x9d   :  { %v82_v23 = vrot.slane %v74_v22, %v81_v20 }
  0x9f   :  { %v84_v24 = vsub.f32 %v54_v1, %v82_v23  ;;  %v85_v25 = vsub.f32 %v55_v2, %v82_v23  ;;  %v160_v1 = vsub.s32 3, %v1342_v19  ;;  %v149_v2 = vrot.slane %v145_v59, %v1362_v58 }
  0xa1   :  { %v86_v26 = vmul.f32 %v84_v24, %v84_v24  ;;  %v87_v27 = vmul.f32 %v85_v25, %v85_v25  ;;  %v161_v8 = vrot.slane %v145_v59, %v160_v1  ;;  %vm179_vm3 = vcmp.eq.s32.totalorder %v149_v2, 0 }
  0xa2   :  { %vm183_vm4 = vcmp.eq.s32.totalorder %v149_v2, 15 }
  0xa3   :  { %v90_v28 = vcombine.high %v86_v26, %v86_v26  ;;  %v91_v29 = vcombine.high %v87_v27, %v87_v27  ;;  %v94_v30 = vsel %vm64_vm0, %v86_v26, 0.0  ;;  %v97_v33 = vsel %vm64_vm0, %v87_v27, 0.0 }
  0xa4   :  { %vm182_vm7 = vcmp.eq.s32.totalorder %v161_v8, 0  ;;  %vm186_vm8 = vcmp.eq.s32.totalorder %v161_v8, 15 }
  0xa5   :  { %v95_v31 = vsel %vm64_vm0, %v90_v28, 0.0  ;;  %v99_v35 = vsel %vm64_vm0, %v91_v29, 0.0 }
  0xa6   :  { %v96_v32 = vadd.f32 %v95_v31, %v94_v30 }
  0xa8   :  { %v98_v34 = vadd.f32 %v97_v33, %v96_v32 }
  0xaa   :  { %v100_v36 = vadd.f32 %v99_v35, %v98_v34 }
  0xac   :  { %101 = vadd.xlane.f32.xlu0 %v100_v36 }
 0x139   :  { %v102_v37 = vpop.xlane.xlu0 %101 }
 0x13a   :  { %v103_v38 = vmul.f32 0.001953125, %v102_v37 }
 0x13c   :  { %v104_v39 = vadd.f32 1e-05, %v103_v38 }
 0x13e   :  { %1184 = vrsqrt.f32 %v104_v39 }
 0x148   :  { %v1185_v41 = vpop.eup %1184 }
 0x149   :  { %v113_v42 = vrot.slane %v1185_v41, %v81_v20 }
 0x14b   :  { %v115_v44 = vmul.f32 %v113_v42, %v84_v24  ;;  %v116_v45 = vmul.f32 %v113_v42, %v85_v25 }
 0x14d   :  { %v129_v47 = vmul.f32 %v127_v46, %v115_v44  ;;  %v130_v48 = vmul.f32 %v127_v46, %v116_v45 }
 0x14f   :  { %v143_v50 = vadd.f32 %v141_v49, %v129_v47  ;;  %v1349_v51 = vadd.f32 %v141_v49, %v130_v48 }
 0x151   :  { %v1353_v52 = vcombine.high %v1349_v51, %v1349_v51  ;;  %v197_v53 = vcombine.high %v143_v50, %v143_v50 }
 0x153   :  { %v1090_v54 = vpack.i.bf16 %v1353_v52, %v1349_v51  ;;  %v1067_v55 = vpack.c.bf16 %v1353_v52, %v1349_v51  ;;  %v1085_v56 = vpack.i.bf16 %v197_v53, %v143_v50  ;;  %v1066_v57 = vpack.c.bf16 %v197_v53, %v143_v50 }
 0x155   :  { %1091 = vrot.lane.b32.xlu1 %v1090_v54, %s1232_s5  ;;  %396 = vst [vmem:[#allocation2 + $0x28] sm:$0x33] %v1067_v55  ;;  %1086 = vrot.lane.b32.xlu0 %v1085_v56, %s1232_s5  ;;  %395 = vst [vmem:[#allocation2 + $0x20] sm:$0x33] %v1066_v57 }
 0x159   :  { %1096 = vrot.lane.b32.xlu1 %v1085_v56, %s1233_s6 }
 0x15d   :  { %1101 = vrot.lane.b32.xlu1 %v1090_v54, %s1233_s6 }
 0x161   :  { %1106 = vrot.lane.b32.xlu1 %v1085_v56, %s1234_s26 }
 0x165   :  { %1111 = vrot.lane.b32.xlu1 %v1085_v56, %s1235_s27 }
 0x1c7   :  { %v1092_v61 = vpop.permute.xlu1 %1091  ;;  %v1087_v62 = vpop.permute.xlu0 %1086 }
 0x1c8   :  { %v1094_v3 = vunpack.i.h.bf16 %v1092_v61  ;;  %v1088_v4 = vunpack.i.l.bf16 %v1087_v62  ;;  %v1093_v11 = vunpack.i.l.bf16 %v1092_v61  ;;  %v1089_v12 = vunpack.i.h.bf16 %v1087_v62 }
 0x1ca   :  { %v215_v14 = vsel %vm211_vm1, %v1094_v3, %v1088_v4  ;;  %v212_v24 = vsel %vm211_vm1, %v1093_v11, %v1094_v3  ;;  %v213_v25 = vsel %vm211_vm1, %v1089_v12, %v1093_v11  ;;  %v214_v26 = vsel %vm211_vm1, %v1088_v4, %v1089_v12 }
 0x1cb   :  { %v1097_v5 = vpop.permute.xlu1 %1096 }
 0x1cc   :  { %v1099_v9 = vunpack.i.h.bf16 %v1097_v5  ;;  %v1098_v10 = vunpack.i.l.bf16 %v1097_v5 }
 0x1ce   :  { %v227_v15 = vsel %vm224_vm2, %v1098_v10, %v1099_v9 }
 0x1cf   :  { %v1102_v16 = vpop.permute.xlu1 %1101  ;;  %v229_v18 = vsel %vm179_vm3, %v227_v15, %v215_v14  ;;  %v233_v35 = vsel %vm183_vm4, %v215_v14, %v227_v15 }
 0x1d0   :  { %v1104_v20 = vunpack.i.h.bf16 %v1102_v16  ;;  %v1103_v21 = vunpack.i.l.bf16 %v1102_v16  ;;  %v1120_v22 = vpack.i.bf16 %v229_v18, %v1349_v51  ;;  %v1115_v23 = vpack.i.bf16 %v229_v18, %v1353_v52 }
 0x1d2   :  { %v225_v27 = vsel %vm224_vm2, %v1103_v21, %v1104_v20  ;;  %v226_v28 = vsel %vm224_vm2, %v1099_v9, %v1103_v21  ;;  %v228_v29 = vsel %vm224_vm2, %v1104_v20, %v1098_v10  ;;  %1121 = vrot.lane.b32.xlu0 %v1120_v22, %s1235_s27  ;;  %1116 = vrot.lane.b32.xlu1 %v1115_v23, %s1234_s26 }
 0x1d3   :  { %v230_v30 = vsel %vm180_vm5, %v226_v28, %v214_v26  ;;  %v231_v31 = vsel %vm181_vm6, %v225_v27, %v213_v25  ;;  %v232_v32 = vsel %vm182_vm7, %v228_v29, %v212_v24  ;;  %v236_v38 = vsel %vm186_vm8, %v212_v24, %v228_v29  ;;  %v1420_v54 = vpop.permute.xlu1 %1106 }
 0x1d4   :  { %v1130_v33 = vpack.i.bf16 %v231_v31, %v230_v30  ;;  %v1060_v34 = vpack.c.bf16 %v230_v30, %v229_v18  ;;  %v1061_v36 = vpack.c.bf16 %v232_v32, %v231_v31  ;;  %v1125_v37 = vpack.i.bf16 %v232_v32, %v230_v30 }
 0x1d5   :  { %v234_v39 = vsel %vm184_vm9, %v214_v26, %v226_v28  ;;  %v235_v43 = vsel %vm185_vm10, %v213_v25, %v225_v27  ;;  %v1140_v44 = vpack.i.bf16 %v1349_v51, %v236_v38  ;;  %v1160_v50 = vpack.i.bf16 %v236_v38, %v232_v32  ;;  %v516_v51 = vld [vmem:[%s1645_s4] sm:$0xff] }
 0x1d6   :  { %1131 = vrot.lane.b32.xlu0 %v1130_v33, %s1235_s27  ;;  %v303_v40 = vrot.slane %v1060_v34, 6  ;;  %v1072_v41 = vpack.c.bf16 %v234_v39, %v233_v35  ;;  %v304_v42 = vrot.slane %v1061_v36, 6  ;;  %1126 = vrot.lane.b32.xlu1 %v1125_v37, %s1234_s26  ;;  %v1135_v46 = vpack.i.bf16 %v234_v39, %v233_v35 }
 0x1d7   :  { %v1073_v47 = vpack.c.bf16 %v236_v38, %v235_v43  ;;  %v1150_v49 = vpack.i.bf16 %v1353_v52, %v235_v43  ;;  %v1155_v53 = vpack.i.bf16 %v235_v43, %v231_v31  ;;  %v162_v52 = vld [vmem:[%s1643_s2] sm:$0xf]  ;;  %v1425_v55 = vpop.permute.xlu1 %1111  ;;  %v1109_v59 = vunpack.i.h.bf16 %v1420_v54 }
 0x1d8   :  { %307 = vst [vmem:[#allocation2 + $0x10] sm:$0xcc] %v303_v40  ;;  %v481_v45 = vrot.slane %v1072_v41, 6  ;;  %308 = vst [vmem:[#allocation2 + $0x18] sm:$0xcc] %v304_v42  ;;  %v1429_v56 = vrot.slane %v162_v52, %v152_v63  ;;  %v1432_v57 = vrot.slane %v162_v52, %v1362_v58  ;;  %v1108_v61 = vunpack.i.l.bf16 %v1420_v54 }
 0x1d9   :  { %v482_v48 = vrot.slane %v1073_v47, 6  ;;  %v1114_v62 = vunpack.i.h.bf16 %v1425_v55  ;;  %v1113_v2 = vunpack.i.l.bf16 %v1425_v55  ;;  %v1496_v34 = vrot.slane %v162_v52, %v156_v0 }
 0x1da   :  { %1141 = vrot.lane.b32.xlu0 %v1140_v44, %s1234_s26  ;;  %485 = vst [vmem:[#allocation2 + $0x20] sm:$0xcc] %v481_v45  ;;  %1136 = vrot.lane.b32.xlu1 %v1135_v46, %s1234_s26  ;;  %vm188_vm13 = vcmp.eq.s32.totalorder %v1429_v56, 0  ;;  %vm192_vm14 = vcmp.eq.s32.totalorder %v1429_v56, 15  ;;  %vm187_vm15 = vcmp.eq.s32.totalorder %v1432_v57, 0  ;;  %vm191_vm1 = vcmp.eq.s32.totalorder %v1432_v57, 15 }
 0x1db   :  { %486 = vst [vmem:[#allocation2 + $0x28] sm:$0xcc] %v482_v48  ;;  %v337_v6 = vsel %vm245_vm11, %v1108_v61, %v1109_v59  ;;  %v349_v7 = vsel %vm258_vm12, %v1113_v2, %v1114_v62  ;;  %v1500_v35 = vrot.slane %v162_v52, %v160_v1  ;;  %vm189_vm2 = vcmp.eq.s32.totalorder %v1496_v34, 0 }
 0x1dc   :  { %vm193_vm4 = vcmp.eq.s32.totalorder %v1496_v34, 15  ;;  %vm576_vm6 = vcmask 1041408   ;;  %vm572_vm7 = vcmask 293888  }
 0x1dd   :  { %vm190_vm3 = vcmp.eq.s32.totalorder %v1500_v35, 0  ;;  %vm194_vm5 = vcmp.eq.s32.totalorder %v1500_v35, 15 }
 0x1de   :  { %1151 = vrot.lane.b32.xlu0 %v1150_v49, %s1235_s27  ;;  %1146 = vrot.lane.b32.xlu1 %v1135_v46, %s1235_s27 }
 0x1e2   :  { %1161 = vrot.lane.b32.xlu0 %v1160_v50, %s1235_s27  ;;  %1156 = vrot.lane.b32.xlu1 %v1155_v53, %s1234_s26 }
 0x1e6   :  { %519 = vperm.xlu1 %1084, %v516_v51  }
 0x244   :  { %v1442_v63 = vpop.permute.xlu0 %1121  ;;  %v1117_v3 = vpop.permute.xlu1 %1116 }
 0x245   :  { %v1123_v4 = vunpack.i.l.bf16 %v1442_v63  ;;  %v1118_v5 = vunpack.i.l.bf16 %v1117_v3  ;;  %v1124_v8 = vunpack.i.h.bf16 %v1442_v63  ;;  %v1119_v24 = vunpack.i.h.bf16 %v1117_v3 }
 0x247   :  { %v348_v9 = vsel %vm258_vm12, %v1114_v62, %v1123_v4  ;;  %v338_v10 = vsel %vm245_vm11, %v1118_v5, %v1108_v61 }
 0x248   :  { %v352_v11 = vsel %vm188_vm13, %v348_v9, %v337_v6  ;;  %v356_v12 = vsel %vm192_vm14, %v337_v6, %v348_v9  ;;  %v351_v14 = vsel %vm187_vm15, %v349_v7, %v338_v10  ;;  %v355_v15 = vsel %vm191_vm1, %v338_v10, %v349_v7  ;;  %v1468_v16 = vpop.permute.xlu0 %1131  ;;  %v1472_v23 = vpop.permute.xlu1 %1126 }
 0x249   :  { %v1064_v18 = vpack.c.bf16 %v352_v11, %v351_v14  ;;  %v1068_v20 = vpack.c.bf16 %v356_v12, %v355_v15  ;;  %v1134_v21 = vunpack.i.h.bf16 %v1468_v16  ;;  %v1133_v22 = vunpack.i.l.bf16 %v1468_v16 }
 0x24a   :  { %v1129_v25 = vunpack.i.h.bf16 %v1472_v23  ;;  %v1128_v26 = vunpack.i.l.bf16 %v1472_v23 }
 0x24b   :  { %v373_v27 = vrot.slane %v1064_v18, 6  ;;  %v411_v28 = vrot.slane %v1068_v20, 6  ;;  %v260_v29 = vsel %vm258_vm12, %v1133_v22, %v1134_v21  ;;  %v261_v30 = vsel %vm258_vm12, %v1124_v8, %v1133_v22 }
 0x24c   :  { %v249_v31 = vsel %vm245_vm11, %v1129_v25, %v1119_v24  ;;  %v248_v32 = vsel %vm245_vm11, %v1119_v24, %v1128_v26  ;;  %v1492_v33 = vpop.permute.xlu0 %1141  ;;  %v1137_v0 = vpop.permute.xlu1 %1136 }
 0x24d   :  { %377 = vst [vmem:[#allocation2] sm:$0xcc] %v373_v27  ;;  %415 = vst [vmem:[#allocation2 + $0x30] sm:$0xcc] %v411_v28  ;;  %v263_v36 = vsel %vm187_vm15, %v261_v30, %v249_v31  ;;  %v267_v37 = vsel %vm191_vm1, %v249_v31, %v261_v30  ;;  %v264_v38 = vsel %vm188_vm13, %v260_v29, %v248_v32  ;;  %v1144_v1 = vunpack.i.h.bf16 %v1492_v33 }
 0x24e   :  { %v268_v39 = vsel %vm192_vm14, %v248_v32, %v260_v29  ;;  %v1058_v40 = vpack.c.bf16 %v264_v38, %v263_v36  ;;  %v1143_v42 = vunpack.i.l.bf16 %v1492_v33  ;;  %v1139_v43 = vunpack.i.h.bf16 %v1137_v0 }
 0x24f   :  { %v1062_v41 = vpack.c.bf16 %v268_v39, %v267_v37  ;;  %v1138_v44 = vunpack.i.l.bf16 %v1137_v0  ;;  %v335_v49 = vsel %vm245_vm11, %v1144_v1, %v1118_v5  ;;  %v336_v50 = vsel %vm245_vm11, %v1109_v59, %v1144_v1 }
 0x250   :  { %287 = vst [vmem:[#allocation2] sm:$0x33] %v1058_v40  ;;  %v1152_v45 = vpop.permute.xlu0 %1151  ;;  %v1147_v48 = vpop.permute.xlu1 %1146 }
 0x251   :  { %325 = vst [vmem:[#allocation2 + $0x30] sm:$0x33] %v1062_v41  ;;  %v1154_v46 = vunpack.i.h.bf16 %v1152_v45  ;;  %v1153_v47 = vunpack.i.l.bf16 %v1152_v45  ;;  %v1149_v53 = vunpack.i.h.bf16 %v1147_v48  ;;  %v1148_v51 = vunpack.i.l.bf16 %v1147_v48 }
 0x252   :  { %v427_v52 = vsel %vm245_vm11, %v1138_v44, %v1139_v43  ;;  %v428_v61 = vsel %vm245_vm11, %v1143_v42, %v1138_v44 }
 0x253   :  { %v347_v62 = vsel %vm258_vm12, %v1123_v4, %v1154_v46  ;;  %v350_v3 = vsel %vm258_vm12, %v1154_v46, %v1113_v2  ;;  %v438_v55 = vsel %vm258_vm12, %v1149_v53, %v1153_v47  ;;  %v439_v2 = vsel %vm258_vm12, %v1148_v51, %v1149_v53  ;;  %v505_v53 = vld [vmem:[%s1644_s3] sm:$0xf] }
 0x254   :  { %v353_v54 = vsel %vm189_vm2, %v347_v62, %v336_v50  ;;  %v354_v59 = vsel %vm190_vm3, %v350_v3, %v335_v49  ;;  %v357_v5 = vsel %vm193_vm4, %v336_v50, %v347_v62  ;;  %v358_v6 = vsel %vm194_vm5, %v335_v49, %v350_v3  ;;  %v1162_v4 = vpop.permute.xlu0 %1161  ;;  %v1157_v10 = vpop.permute.xlu1 %1156 }
 0x255   :  { %v1065_v7 = vpack.c.bf16 %v354_v59, %v353_v54  ;;  %v1069_v9 = vpack.c.bf16 %v358_v6, %v357_v5  ;;  %v441_v11 = vsel %vm187_vm15, %v439_v2, %v428_v61  ;;  %v442_v12 = vsel %vm188_vm13, %v438_v55, %v427_v52 }
 0x256   :  { %v445_v14 = vsel %vm191_vm1, %v428_v61, %v439_v2  ;;  %v446_v15 = vsel %vm192_vm14, %v427_v52, %v438_v55  ;;  %v1070_v22 = vpack.c.bf16 %v442_v12, %v441_v11  ;;  %v1164_v27 = vunpack.i.h.bf16 %v1162_v4 }
 0x257   :  { %v374_v18 = vrot.slane %v1065_v7, 6  ;;  %v412_v20 = vrot.slane %v1069_v9, 6  ;;  %v1074_v24 = vpack.c.bf16 %v446_v15, %v445_v14  ;;  %v1163_v28 = vunpack.i.l.bf16 %v1162_v4 }
 0x258   :  { %v1159_v29 = vunpack.i.h.bf16 %v1157_v10  ;;  %v1158_v30 = vunpack.i.l.bf16 %v1157_v10  ;;  %465 = vst [vmem:[#allocation2 + $0x10] sm:$0x33] %v1070_v22  ;;  %v437_v31 = vsel %vm258_vm12, %v1153_v47, %v1164_v27  ;;  %v440_v32 = vsel %vm258_vm12, %v1164_v27, %v1148_v51  ;;  %v1175_v45 = vld [vmem:[#allocation2 + $0x20] ss:$16 sps:$4 sm:$0xff]  }
 0x259   :  { %378 = vst [vmem:[#allocation2 + $0x8] sm:$0xcc] %v374_v18  ;;  %416 = vst [vmem:[#allocation2 + $0x38] sm:$0xcc] %v412_v20  ;;  %v259_v57 = vsel %vm258_vm12, %v1134_v21, %v1163_v28  ;;  %v262_v56 = vsel %vm258_vm12, %v1163_v28, %v1124_v8  ;;  %vm740_vm12 = vcmask 64512   ;;  %vm999_vm1 = vcmp.lt.s32.totalorder %v79_v17, 512 }
 0x25a   :  { %503 = vst [vmem:[#allocation2 + $0x40] sm:$0x33] %v1074_v24  ;;  %v425_v33 = vsel %vm245_vm11, %v1159_v29, %v1143_v42  ;;  %v246_v16 = vsel %vm245_vm11, %v1158_v30, %v1129_v25  ;;  %v247_v63 = vsel %vm245_vm11, %v1128_v26, %v1158_v30  ;;  %v426_v8 = vsel %vm245_vm11, %v1139_v43, %v1159_v29  ;;  %v1171_v43 = vld [vmem:[#allocation2 + $0x24] ss:$16 sps:$4 sm:$0xff]  }
 0x25b   :  { %v265_v21 = vsel %vm189_vm2, %v259_v57, %v247_v63  ;;  %v266_v36 = vsel %vm190_vm3, %v262_v56, %v246_v16  ;;  %v269_v37 = vsel %vm193_vm4, %v247_v63, %v259_v57  ;;  %v270_v25 = vsel %vm194_vm5, %v246_v16, %v262_v56  ;;  %v672_v63 = vld [vmem:[%s1649_s8] sm:$0xff] }
 0x25c   :  { %v1059_v38 = vpack.c.bf16 %v266_v36, %v265_v21  ;;  %v1063_v23 = vpack.c.bf16 %v270_v25, %v269_v37  ;;  %v443_v26 = vsel %vm189_vm2, %v437_v31, %v426_v8  ;;  %v444_v60 = vsel %vm190_vm3, %v440_v32, %v425_v33 }
 0x25d   :  { %v447_v39 = vsel %vm193_vm4, %v426_v8, %v437_v31  ;;  %v448_v0 = vsel %vm194_vm5, %v425_v33, %v440_v32  ;;  %v1071_v40 = vpack.c.bf16 %v444_v60, %v443_v26  ;;  %v734_v8 = vld [vmem:[%s1651_s10] sm:$0xff] }
 0x25e   :  { %288 = vst [vmem:[#allocation2 + $0x8] sm:$0x33] %v1059_v38  ;;  %326 = vst [vmem:[#allocation2 + $0x38] sm:$0x33] %v1063_v23  ;;  %v1075_v41 = vpack.c.bf16 %v448_v0, %v447_v39 }
 0x25f   :  { %466 = vst [vmem:[#allocation2 + $0x18] sm:$0x33] %v1071_v40  ;;  %v1168_v1 = vld [vmem:[#allocation2 + $0x4] ss:$16 sps:$4 sm:$0xff]   ;;  %v1170_v42 = vld [vmem:[#allocation2] ss:$16 sps:$4 sm:$0xff]  }
 0x260   :  { %504 = vst [vmem:[#allocation2 + $0x48] sm:$0x33] %v1075_v41  ;;  %589 = vmatprep.subr.bf16.mxu0 %v1168_v1 }
 0x261   :  { %590 = vmatpush1.bf16.msra.mxu0 %v1170_v42  ;;  %v514_v44 = vld [vmem:[#allocation2 + $0x40] sm:$0x33] }
 0x262   :  { %591 = vmatprep.subr.bf16.mxu0 %v1171_v43  ;;  %v1043_v46 = vcombine.high %v514_v44, %v514_v44  ;;  %v1042_v34 = vcombine.low %v514_v44, %v514_v44 }
 0x264   :  { %v578_v49 = vsel %vm576_vm6, %v1042_v34, 0 }
 0x265   :  { %592 = vmatpush1.bf16.msra.mxu0 %v1175_v45  ;;  %v1178_v48 = vld [vmem:[#allocation2 + $0x2c] ss:$16 sps:$4 sm:$0xff]   ;;  %v1181_v51 = vld [vmem:[#allocation2 + $0x28] ss:$16 sps:$4 sm:$0xff]   ;;  %v520_v54 = vpop.permute.xlu1 %519 }
 0x266   :  { %v1173_v47 = vld [vmem:[#allocation2 + $0xc] ss:$16 sps:$4 sm:$0xff]   ;;  %v1176_v35 = vld [vmem:[#allocation2 + $0x8] ss:$16 sps:$4 sm:$0xff]   ;;  %1046 = vmatprep.subr.msk.bf16.mxu0 %vm576_vm6, %v1043_v46 }
 0x267   :  { %630 = vmatprep.subr.bf16.mxu1 %v1173_v47  ;;  %v515_v50 = vld [vmem:[#allocation2 + $0x48] sm:$0x33] }
 0x268   :  { %631 = vmatpush1.bf16.msra.mxu1 %v1176_v35  ;;  %v1045_v52 = vcombine.high %v515_v50, %v515_v50  ;;  %v1044_v61 = vcombine.low %v515_v50, %v515_v50 }
 0x269   :  { %632 = vmatprep.subr.bf16.mxu1 %v1178_v48  ;;  %594 = vmatpush1.bf16.msra.mxu0 %v578_v49 }
 0x26a   :  { %v584_v62 = vsel %vm576_vm6, %v1044_v61, 0 }
 0x26c   :  { %633 = vmatpush1.bf16.msra.mxu1 %v1181_v51  ;;  %1047 = vmatmul.mubr.msk.bf16.vlgmr.msra.gmra.mrb[0].mxu0 %vm572_vm7, %v505_v53 }
 0x26d   :  { %1048 = vmatprep.subr.msk.bf16.mxu1 %vm576_vm6, %v1045_v52  ;;  %788 = vmatprep.mubr.bf16.mxu0 %v1230_v13 }
 0x270   :  { %635 = vmatpush1.bf16.msra.mxu1 %v584_v62 }
 0x273   :  { %1049 = vmatmul.mubr.msk.bf16.vlgmr.msra.gmra.mrb[0].mxu1 %vm572_vm7, %v505_v53 }
 0x274   :  { %829 = vmatprep.mubr.bf16.mxu1 %v1230_v13  ;;  %v671_v13 = vld [vmem:[%s1648_s7] sm:$0xff] }
 0x33f   :  { %v623_v3 = vpop.f32.mrb[0].mxu0 }
 0x340   :  { %v625_v59 = vpop.f32.mrb[1].mxu0  ;;  %v624_v5 = vadd.f32 %v623_v3, %v520_v54 }
 0x341   :  { %v626_v6 = vadd.f32 %v625_v59, %v520_v54  ;;  %v627_v7 = vpop.f32.mrb[2].mxu0 }
 0x342   :  { %v628_v9 = vpop.f32.mrb[3].mxu0 }
 0x343   :  { %v673_v55 = vadd.f32 %v626_v6, %v624_v5 }
 0x346   :  { %v664_v2 = vpop.f32.mrb[0].mxu1 }
 0x347   :  { %v665_v4 = vadd.f32 %v664_v2, %v520_v54  ;;  %v666_v10 = vpop.f32.mrb[1].mxu1 }
 0x348   :  { %v667_v11 = vadd.f32 %v666_v10, %v520_v54  ;;  %v668_v12 = vpop.f32.mrb[2].mxu1 }
 0x349   :  { %v674_v14 = vadd.f32 %v673_v55, %v665_v4  ;;  %v669_v15 = vpop.f32.mrb[3].mxu1 }
 0x34b   :  { %v675_v18 = vadd.f32 %v674_v14, %v667_v11 }
 0x34d   :  { %676 = vadd.xlane.f32.xlu0 %v675_v18 }
 0x363   :  { %701 = vperm.xlu0 %1165, %v671_v13  }
 0x3da   :  { %v677_v20 = vpop.xlane.xlu0 %676 }
 0x3db   :  { %v678_v22 = vmul.f32 0.001953125, %v677_v20 }
 0x3dd   :  { %v679_v24 = vsub.f32 %v624_v5, %v678_v22  ;;  %v680_v27 = vsub.f32 %v626_v6, %v678_v22  ;;  %v681_v28 = vsub.f32 %v665_v4, %v678_v22  ;;  %v682_v29 = vsub.f32 %v667_v11, %v678_v22  ;;  %v729_v5 = vld [vmem:[%s1650_s9] sm:$0xf] }
 0x3df   :  { %v683_v30 = vmul.f32 %v679_v24, %v679_v24  ;;  %v684_v57 = vmul.f32 %v680_v27, %v680_v27  ;;  %v685_v56 = vmul.f32 %v681_v28, %v681_v28  ;;  %v686_v32 = vmul.f32 %v682_v29, %v682_v29 }
 0x3e1   :  { %v687_v31 = vadd.f32 %v684_v57, %v683_v30 }
 0x3e2   :  { %v702_v38 = vpop.permute.xlu0 %701 }
 0x3e3   :  { %v688_v33 = vadd.f32 %v687_v31, %v685_v56 }
 0x3e5   :  { %v689_v16 = vadd.f32 %v688_v33, %v686_v32 }
 0x3e7   :  { %690 = vadd.xlane.f32.xlu1 %v689_v16 }
 0x3f8   :  { %710 = vperm.xlu1 %1084, %v672_v63  }
 0x3fc   :  { %737 = vperm.xlu1 %1084, %v734_v8  }
 0x474   :  { %v691_v21 = vpop.xlane.xlu1 %690 }
 0x475   :  { %v692_v36 = vmul.f32 0.001953125, %v691_v21 }
 0x477   :  { %v693_v37 = vadd.f32 1e-05, %v692_v36 }
 0x478   :  { %v711_v42 = vpop.permute.xlu1 %710 }
 0x479   :  { %1186 = vrsqrt.f32 %v693_v37 }
 0x47c   :  { %v738_v6 = vpop.permute.xlu1 %737 }
 0x483   :  { %v1187_v25 = vpop.eup %1186 }
 0x484   :  { %v695_v23 = vmul.f32 %v1187_v25, %v679_v24  ;;  %v696_v26 = vmul.f32 %v1187_v25, %v680_v27  ;;  %v697_v60 = vmul.f32 %v1187_v25, %v681_v28  ;;  %v698_v39 = vmul.f32 %v1187_v25, %v682_v29  ;;  %v838_v27 = vld [vmem:[%s1652_s11] sm:$0xff]  ;;  %v930_v29 = vld [vmem:[#allocation3] sm:$0x1] }
 0x485   :  { %v896_v28 = vld [vmem:[%s1654_s13] sm:$0xff] }
 0x486   :  { %v704_v0 = vmul.f32 %v702_v38, %v695_v23  ;;  %v705_v40 = vmul.f32 %v702_v38, %v696_v26  ;;  %v706_v41 = vmul.f32 %v702_v38, %v697_v60  ;;  %v707_v1 = vmul.f32 %v702_v38, %v698_v39  ;;  %v839_v38 = vld [vmem:[%s1653_s12] sm:$0xff]  ;;  %s1237_s12 = smov [#allocation4]  }
 0x487   :  { %s1008_s13 = sshll.u32 %s1237_s12, 4  ;;  %s1009_s13 = int_to_ptr.vmem [resolvable:$true] %s1008_s13 }
 0x488   :  { %v713_v43 = vadd.f32 %v711_v42, %v704_v0  ;;  %v714_v44 = vadd.f32 %v711_v42, %v705_v40  ;;  %v715_v45 = vadd.f32 %v711_v42, %v706_v41  ;;  %v716_v46 = vadd.f32 %v711_v42, %v707_v1  ;;  %s1206_s0 = scalar_lea.vmem %s1009_s13, 64  ;;  %p1211_p1 = scmp.lt.s32.totalorder %s1009_s13, %s1009_s13 }
 0x489   :  { %p1207_p0 = scmp.ne.s32.totalorder %s1009_s13, %s1206_s0  ;;  %p1212_p2 = scmp.lt.s32.totalorder %s1206_s0, %s1206_s0 }
 0x48a   :  { %vm718_vm8 = vcmp.gt.f32.partialorder %v714_v44, 0.0  ;;  %v722_v34 = vmul.f32 0.2, %v714_v44  ;;  %vm720_vm9 = vcmp.gt.f32.partialorder %v716_v46, 0.0  ;;  %v724_v47 = vmul.f32 0.2, %v716_v46 }
 0x48b   :  { %vm717_vm10 = vcmp.gt.f32.partialorder %v713_v43, 0.0  ;;  %v721_v35 = vmul.f32 0.2, %v713_v43  ;;  %vm719_vm11 = vcmp.gt.f32.partialorder %v715_v45, 0.0  ;;  %v723_v48 = vmul.f32 0.2, %v715_v45  ;;  %p1213_p3 = por %p1212_p2, %p1211_p1 }
 0x48c   :  { %v726_v49 = vsel %vm718_vm8, %v714_v44, %v722_v34  ;;  %v728_v50 = vsel %vm720_vm9, %v716_v46, %v724_v47 }
 0x48d   :  { %v731_v53 = vpack.c.bf16 %v726_v49, %v726_v49  ;;  %v733_v51 = vpack.c.bf16 %v728_v50, %v728_v50  ;;  %v725_v52 = vsel %vm717_vm10, %v713_v43, %v721_v35  ;;  %v727_v61 = vsel %vm719_vm11, %v715_v45, %v723_v48  ;;  %p1214_p4 = pnand %p1213_p3, %p1207_p0 }
 0x48e   :  { %v730_v62 = vpack.c.bf16 %v725_v52, %v725_v52  ;;  %v732_v3 = vpack.c.bf16 %v727_v61, %v727_v61 }
 0x48f   :  { %1050 = vmatprep.subr.msk.bf16.mxu0 %vm64_vm0, %v731_v53  ;;  %1052 = vmatprep.subr.msk.bf16.mxu1 %vm64_vm0, %v733_v51 }
 0x490   :  { %v745_v54 = vsel %vm64_vm0, %v730_v62, 0  ;;  %v751_v59 = vsel %vm64_vm0, %v732_v3, 0 }
 0x491   :  { %757 = vmatpush1.bf16.msra.mxu0 %v745_v54  ;;  %798 = vmatpush1.bf16.msra.mxu1 %v751_v59 }
 0x494   :  { %1051 = vmatmul.mubr.msk.bf16.vlgmr.msra.gmra.mrb[4].mxu0 %vm740_vm12, %v729_v5  ;;  %1053 = vmatmul.mubr.msk.bf16.vlgmr.msra.gmra.mrb[4].mxu1 %vm740_vm12, %v729_v5 }
 0x567   :  { %v790_v7 = vpop.f32.mrb[4].mxu0  ;;  %v831_v9 = vpop.f32.mrb[4].mxu1 }
 0x568   :  { %v791_v55 = vadd.f32 %v790_v7, %v738_v6  ;;  %v792_v2 = vpop.f32.mrb[5].mxu0  ;;  %v833_v4 = vpop.f32.mrb[5].mxu1  ;;  %v832_v18 = vadd.f32 %v831_v9, %v738_v6 }
 0x569   :  { %v793_v10 = vadd.f32 %v792_v2, %v738_v6  ;;  %v794_v11 = vpop.f32.mrb[6].mxu0  ;;  %v835_v12 = vpop.f32.mrb[6].mxu1  ;;  %v834_v20 = vadd.f32 %v833_v4, %v738_v6 }
 0x56a   :  { %v795_v14 = vpop.f32.mrb[7].mxu0  ;;  %v836_v15 = vpop.f32.mrb[7].mxu1 }
 0x56b   :  { %v840_v13 = vadd.f32 %v793_v10, %v791_v55 }
 0x56d   :  { %v841_v22 = vadd.f32 %v840_v13, %v832_v18 }
 0x56f   :  { %v842_v24 = vadd.f32 %v841_v22, %v834_v20 }
 0x571   :  { %843 = vadd.xlane.f32.xlu1 %v842_v24 }
 0x582   :  { %868 = vperm.xlu1 %1084, %v838_v27  }
 0x586   :  { %899 = vperm.xlu1 %1084, %v896_v28  }
 0x58a   :  { %933 = vperm.xlu1 %1084, %v930_v29  }
 0x5fe   :  { %v844_v30 = vpop.xlane.xlu1 %843 }
 0x5ff   :  { %v845_v57 = vmul.f32 0.001953125, %v844_v30 }
 0x601   :  { %v846_v56 = vsub.f32 %v791_v55, %v845_v57  ;;  %v847_v31 = vsub.f32 %v793_v10, %v845_v57  ;;  %v848_v32 = vsub.f32 %v832_v18, %v845_v57  ;;  %v849_v33 = vsub.f32 %v834_v20, %v845_v57 }
 0x602   :  { %v869_v42 = vpop.permute.xlu1 %868 }
 0x603   :  { %v850_v16 = vmul.f32 %v846_v56, %v846_v56  ;;  %v851_v63 = vmul.f32 %v847_v31, %v847_v31  ;;  %v852_v8 = vmul.f32 %v848_v32, %v848_v32  ;;  %v853_v36 = vmul.f32 %v849_v33, %v849_v33 }
 0x605   :  { %v854_v21 = vadd.f32 %v851_v63, %v850_v16 }
 0x606   :  { %v900_v61 = vpop.permute.xlu1 %899 }
 0x607   :  { %v855_v37 = vadd.f32 %v854_v21, %v852_v8 }
 0x609   :  { %v856_v25 = vadd.f32 %v855_v37, %v853_v36 }
 0x60a   :  { %v934_v29 = vpop.permute.xlu1 %933 }
 0x60b   :  { %857 = vadd.xlane.f32.xlu0 %v856_v25 }
 0x621   :  { %877 = vperm.xlu0 %1165, %v839_v38  }
 0x698   :  { %v858_v23 = vpop.xlane.xlu0 %857 }
 0x699   :  { %v859_v26 = vmul.f32 0.001953125, %v858_v23 }
 0x69b   :  { %v860_v60 = vadd.f32 1e-05, %v859_v26 }
 0x69d   :  { %1188 = vrsqrt.f32 %v860_v60 }
 0x6a0   :  { %v878_v34 = vpop.permute.xlu0 %877 }
 0x6a7   :  { %v1189_v39 = vpop.eup %1188 }
 0x6a8   :  { %v862_v0 = vmul.f32 %v1189_v39, %v846_v56  ;;  %v863_v40 = vmul.f32 %v1189_v39, %v847_v31  ;;  %v864_v41 = vmul.f32 %v1189_v39, %v848_v32  ;;  %v865_v1 = vmul.f32 %v1189_v39, %v849_v33 }
 0x6a9   :  { %v939_v33 = vrot.slane %v934_v29, %v1362_v58 }
 0x6aa   :  { %v871_v43 = vmul.f32 %v869_v42, %v862_v0  ;;  %v872_v44 = vmul.f32 %v869_v42, %v863_v40  ;;  %v873_v45 = vmul.f32 %v869_v42, %v864_v41  ;;  %v874_v46 = vmul.f32 %v869_v42, %v865_v1 }
 0x6ac   :  { %v880_v47 = vadd.f32 %v878_v34, %v871_v43  ;;  %v881_v35 = vadd.f32 %v878_v34, %v872_v44  ;;  %v882_v48 = vadd.f32 %v878_v34, %v873_v45  ;;  %v883_v49 = vadd.f32 %v878_v34, %v874_v46 }
 0x6ad   :  { %v1236_v45 = vmov 1966171168  }
 0x6ae   :  { %vm884_vm0 = vcmp.gt.f32.partialorder %v880_v47, 0.0  ;;  %vm885_vm13 = vcmp.gt.f32.partialorder %v881_v35, 0.0  ;;  %vm886_vm14 = vcmp.gt.f32.partialorder %v882_v48, 0.0  ;;  %vm887_vm15 = vcmp.gt.f32.partialorder %v883_v49, 0.0 }
 0x6af   :  { %v888_v50 = vmul.f32 0.2, %v880_v47  ;;  %v889_v53 = vmul.f32 0.2, %v881_v35  ;;  %v890_v51 = vmul.f32 0.2, %v882_v48  ;;  %v975_v46 = vunpack.c.l.s4 %v1236_v45 }
 0x6b0   :  { %v891_v52 = vmul.f32 0.2, %v883_v49 }
 0x6b1   :  { %v892_v62 = vsel %vm884_vm0, %v880_v47, %v888_v50  ;;  %v893_v3 = vsel %vm885_vm13, %v881_v35, %v889_v53  ;;  %v894_v54 = vsel %vm886_vm14, %v882_v48, %v890_v51  ;;  %v976_v34 = vunpack.c.0.s8 %v975_v46 }
 0x6b2   :  { %v895_v59 = vsel %vm887_vm15, %v883_v49, %v891_v52  ;;  %v902_v5 = vmul.f32 %v900_v61, %v892_v62  ;;  %v903_v6 = vmul.f32 %v900_v61, %v893_v3  ;;  %v904_v7 = vmul.f32 %v900_v61, %v894_v54 }
 0x6b3   :  { %v905_v9 = vmul.f32 %v900_v61, %v895_v59  ;;  %v979_v35 = vsub.s32 %v976_v34, %v1342_v19 }
 0x6b4   :  { %v906_v55 = vrot.slane %v902_v5, 4  ;;  %v912_v2 = vrot.slane %v903_v6, 4  ;;  %v918_v4 = vrot.slane %v904_v7, 4 }
 0x6b5   :  { %v924_v10 = vrot.slane %v905_v9, 4 }
 0x6b6   :  { %v907_v11 = vadd.f32 %v906_v55, %v902_v5  ;;  %v913_v12 = vadd.f32 %v912_v2, %v903_v6  ;;  %v919_v14 = vadd.f32 %v918_v4, %v904_v7 }
 0x6b7   :  { %v925_v15 = vadd.f32 %v924_v10, %v905_v9 }
 0x6b8   :  { %v908_v18 = vrot.slane %v907_v11, 2  ;;  %v914_v13 = vrot.slane %v913_v12, 2  ;;  %v920_v20 = vrot.slane %v919_v14, 2 }
 0x6b9   :  { %v926_v22 = vrot.slane %v925_v15, 2 }
 0x6ba   :  { %v909_v24 = vadd.f32 %v908_v18, %v907_v11  ;;  %v915_v27 = vadd.f32 %v914_v13, %v913_v12  ;;  %v921_v28 = vadd.f32 %v920_v20, %v919_v14 }
 0x6bb   :  { %v927_v30 = vadd.f32 %v926_v22, %v925_v15 }
 0x6bc   :  { %v910_v57 = vrot.slane %v909_v24, 1  ;;  %v916_v56 = vrot.slane %v915_v27, 1  ;;  %v922_v31 = vrot.slane %v921_v28, 1 }
 0x6bd   :  { %v928_v32 = vrot.slane %v927_v30, 1 }
 0x6be   :  { %v911_v16 = vadd.f32 %v910_v57, %v909_v24  ;;  %v917_v63 = vadd.f32 %v916_v56, %v915_v27  ;;  %v923_v8 = vadd.f32 %v922_v31, %v921_v28 }
 0x6bf   :  { %v929_v21 = vadd.f32 %v928_v32, %v927_v30 }
 0x6c0   :  { %v940_v36 = vadd.f32 %v939_v33, %v911_v16  ;;  %v941_v37 = vadd.f32 %v939_v33, %v917_v63  ;;  %v942_v25 = vadd.f32 %v939_v33, %v923_v8 }
 0x6c1   :  { %v943_v38 = vadd.f32 %v939_v33, %v929_v21 }
 0x6c2   :  { %v1054_v23 = vmul.f32 -1.442695, %v940_v36  ;;  %v1055_v26 = vmul.f32 -1.442695, %v941_v37  ;;  %v1056_v60 = vmul.f32 -1.442695, %v942_v25 }
 0x6c3   :  { %v1057_v39 = vmul.f32 -1.442695, %v943_v38 }
 0x6c4   :  { %1190 = vpow2.f32 %v1054_v23 }
 0x6c5   :  { %1192 = vpow2.f32 %v1055_v26 }
 0x6c6   :  { %1194 = vpow2.f32 %v1056_v60 }
 0x6c7   :  { %1196 = vpow2.f32 %v1057_v39 }
 0x6ce   :  { %v1191_v0 = vpop.eup %1190 }
 0x6cf   :  { %v1193_v40 = vpop.eup %1192  ;;  %v956_v41 = vadd.f32 1.0, %v1191_v0 }
 0x6d0   :  { %v1195_v58 = vpop.eup %1194  ;;  %v957_v1 = vadd.f32 1.0, %v1193_v40 }
 0x6d1   :  { %v1197_v42 = vpop.eup %1196  ;;  %v958_v43 = vadd.f32 1.0, %v1195_v58  ;;  %1198 = vrcp.f32 %v956_v41 }
 0x6d2   :  { %v959_v44 = vadd.f32 1.0, %v1197_v42  ;;  %1200 = vrcp.f32 %v957_v1 }
 0x6d3   :  { %1202 = vrcp.f32 %v958_v43 }
 0x6d4   :  { %1204 = vrcp.f32 %v959_v44 }
 0x6db   :  { %v1199_v47 = vpop.eup %1198 }
 0x6dc   :  { %v1201_v48 = vpop.eup %1200 }
 0x6dd   :  { %v1203_v49 = vpop.eup %1202  ;;  %v972_v50 = vcombine.low %v1199_v47, %v1201_v48 }
 0x6de   :  { %v1205_v53 = vpop.eup %1204 }
 0x6df   :  { %v973_v51 = vcombine.low %v1203_v49, %v1205_v53  ;;  %v980_v52 = vrot.slane %v972_v50, %v979_v35 }
 0x6e1   :  { %v987_v61 = vrot.slane %v973_v51, %v979_v35 }
 0x6e3   :  { %v988_v62 = vcombine.low %v980_v52, %v987_v61 }
 0x6e5   :  { %v995_v3 = vrot.slane %v988_v62, %v979_v35 }
 0x6e7   :  { %1001 = vst.msk [vmem:[#allocation4] sm:$0xf] %vm999_vm1, %v995_v3 }
 0x6e8   :  { %1217 = shalt.err (!%p1214_p4)
}
 0x6e9   :  { %s1218_s6 = scalar_lea.hbm %s1656_s15, 64 }
 0x6ea   :  { %p1219_p5 = scmp.ne.s32.totalorder %s1656_s15, %s1218_s6  ;;  %p1222_p6 = scmp.lt.u32.totalorder %s1218_s6, %s1656_s15 }
 0x6ec   :  { %p1224_p7 = pnand %p1222_p6, %p1219_p5 }
 0x6ee   :  { %1227 = shalt.err (!%p1224_p7)
}
 0x6ef   :  { %1011 = dma.vmem_to_hbm [thread:$0]  %s1009_s13, 64, %s1656_s15, [#allocation5]  }
 0x6f0   :  { %1228 = dma.done.wait [#allocation5], 64  }
 0x6f1   :  { %1229 = vsyncadd [#allocation5], 4294967232 }
 0x6f2   :  { %1015 = vsyncpa [#allocation5], 1 }

</bundles_post_ra>
